<compile_context>
chip_gen: v6e
topology: v6e:2x2x1
jax: 0.10.0
libtpu: 0.0.40
codegen_flags: <defaults>
</compile_context>

<pallas_src>
import functools

import jax
import jax.numpy as jnp
from jax import lax
from jax.experimental import pallas as pl
from jax.experimental.pallas import tpu as pltpu


def _round_up(x, m):
    return ((x + m - 1) // m) * m


def _fused_gather_kernel(idx_ref, table_ref, out_ref, *, vocab):
    # idx_ref:   (TN/pack, pack*E) int32   idx_exp[r, p*E + j] == flat_idx[r*pack + p]
    # table_ref: (V, 1, pack*E)    f32     row v = `pack` copies of table[v, :]
    # out_ref:   (TN/pack, pack*E) f32     lane-dense (pack*E multiple of 128)
    idx = idx_ref[...]

    def body(v, acc):
        row = table_ref[v]                         # (1, pack*E); dynamic leading-dim index
        return acc + jnp.where(idx == v, row, 0.0)

    acc = lax.fori_loop(0, vocab, body, jnp.zeros(out_ref.shape, jnp.float32))
    out_ref[...] = acc.astype(out_ref.dtype)


def fused_embedding_lookup(flat_idx, table, *, tile_n=1024):
    """Gather rows of `table` (V, E) at `flat_idx` (N,) -> (N, E), one pallas_call."""
    n = flat_idx.shape[0]
    v, e = table.shape

    # Lane-packing factor so the kernel output's minor dim is a multiple of 128.
    if e % 128 == 0:
        pack = 1
    elif 128 % e == 0:
        pack = 128 // e
    else:
        pack = 1                                   # fallback: masked partial stores
    row_mult = 8 * pack                            # keep sublanes a multiple of 8

    tn = min(_round_up(tile_n, row_mult), _round_up(n, row_mult))
    n_pad = _round_up(n, tn)

    idx_p = jnp.pad(flat_idx.astype(jnp.int32), (0, n_pad - n))
    # Every output lane carries its own source-row id (wrapper-side, tiny XLA op).
    idx_exp = jnp.repeat(idx_p.reshape(n_pad // pack, pack), e, axis=1)
    # Replicate each table row across the `pack` lane groups.
    table_tiled = jnp.tile(table, (1, pack)).reshape(v, 1, pack * e)

    out = pl.pallas_call(
        functools.partial(_fused_gather_kernel, vocab=v),
        out_shape=jax.ShapeDtypeStruct((n_pad // pack, pack * e), table.dtype),
        grid_spec=pltpu.PrefetchScalarGridSpec(
            num_scalar_prefetch=0,
            grid=(n_pad // tn,),
            in_specs=[
                pl.BlockSpec((tn // pack, pack * e), lambda i: (i, 0)),
                pl.BlockSpec((v, 1, pack * e), lambda i: (0, 0, 0)),
            ],
            out_specs=pl.BlockSpec((tn // pack, pack * e), lambda i: (i, 0)),
        ),
        compiler_params=pltpu.CompilerParams(
            dimension_semantics=("parallel",)),
    )(idx_exp, table_tiled)

    return out.reshape(n_pad, e)[:n]


class EmbeddingPallas:
    """JAX/Pallas port of models.embedding.Embedding (forward pass)."""

    def __init__(self, conf, key):
        self.conf = conf
        self.total_len = conf["input_length"] + conf["output_length"]
        self.granularity = conf["granularity"]
        self.site_num = conf["site_num"]
        self.emb_size = conf["emb_size"]
        self.minute_vocab = 24 * 60 // self.granularity

        k1, k2, k3 = jax.random.split(key, 3)
        # nn.Embedding default init: N(0, 1)
        self.position_emb = jax.random.normal(
            k1, (self.site_num, self.emb_size), jnp.float32)
        self.week_emb = jax.random.normal(
            k2, (7, self.emb_size), jnp.float32)
        self.minute_emb = jax.random.normal(
            k3, (self.minute_vocab, self.emb_size), jnp.float32)

        # buffer: [[0, 1, ..., site_num-1]]
        self.site_num_tensor = jnp.arange(
            self.site_num, dtype=jnp.int32).reshape(1, self.site_num)

        # Fused vocab: [week | minute | position]
        self._minute_off = 7
        self._pos_off = 7 + self.minute_vocab
        self.fused_table = jnp.concatenate(
            [self.week_emb, self.minute_emb, self.position_emb], axis=0)

    def __call__(self, Dow, M):
        sn, e, mv = self.site_num, self.emb_size, self.minute_vocab

        # Clip each index stream to its own table range (XLA clamp semantics;
        # also prevents cross-table bleed after vocab fusion).
        dow_flat = jnp.clip(Dow.astype(jnp.int32), 0, 6).reshape(-1)
        m_flat = jnp.clip(M.astype(jnp.int32), 0, mv - 1).reshape(-1) + self._minute_off
        pos_flat = jnp.arange(sn, dtype=jnp.int32) + self._pos_off

        n_w = dow_flat.shape[0]
        n_m = m_flat.shape[0]

        flat = jnp.concatenate([dow_flat, m_flat, pos_flat])
        emb = fused_embedding_lookup(flat, self.fused_table)     # (N, E), one kernel launch

        w_emd = emb[:n_w].reshape(-1, self.total_len, sn, e)
        m_emd = emb[n_w:n_w + n_m].reshape(-1, self.total_len, sn, e)
        p_emd = emb[n_w + n_m:].reshape(1, 1, sn, e)

        timestamp = [w_emd, m_emd]
        position = p_emd
        return (timestamp, position)


if __name__ == "__main__":
    conf = dict(input_length=4, output_length=4, granularity=60,
                site_num=16, emb_size=32)
    key = jax.random.PRNGKey(0)
    kparam, kdow, km = jax.random.split(key, 3)

    model = EmbeddingPallas(conf, kparam)

    batch = 2
    total_len = conf["input_length"] + conf["output_length"]
    site_num = conf["site_num"]
    minute_vocab = 24 * 60 // conf["granularity"]

    Dow = jax.random.randint(kdow, (batch, total_len, site_num), 0, 7,
                             dtype=jnp.int32)
    M = jax.random.randint(km, (batch, total_len, site_num), 0, minute_vocab,
                           dtype=jnp.int32)

    fwd = jax.jit(model.__call__)
    (timestamp, position) = fwd(Dow, M)
    w_emd, m_emd = timestamp
    jax.block_until_ready((w_emd, m_emd, position))

    # shape / correctness checks vs. pure-JAX gather
    assert w_emd.shape == (batch, total_len, site_num, conf["emb_size"])
    assert m_emd.shape == (batch, total_len, site_num, conf["emb_size"])
    assert position.shape == (1, 1, site_num, conf["emb_size"])

    w_ref = model.week_emb[Dow]
    m_ref = model.minute_emb[M]
    p_ref = model.position_emb[model.site_num_tensor][None, ...]
    assert jnp.allclose(w_emd, w_ref, atol=1e-5)
    assert jnp.allclose(m_emd, m_ref, atol=1e-5)
    assert jnp.allclose(position, p_ref, atol=1e-5)

    print("KERNEL_OK")
</pallas_src>

<mosaic_0001>
module attributes {stable_mosaic.version = 11 : i64} {
  func.func @_fused_gather_kernel(%arg0: i32, %arg1: memref<136x128xi32, #tpu.memory_space<vmem>>, %arg2: memref<47x1x128xf32, #tpu.memory_space<vmem>>, %arg3: memref<136x128xf32, #tpu.memory_space<vmem>>) attributes {dimension_semantics = [#tpu.dimension_semantics<parallel>], iteration_bounds = array<i64: 1>, scalar_prefetch = 0 : i64, scratch_operands = 0 : i64, tpu.core_type = #tpu.core_type<tc>, window_params = [{transform_indices = @transform_0, window_bounds = array<i64: 136, 128>}, {pipeline_mode = #tpu.pipeline_mode<synchronous>, transform_indices = @transform_1, window_bounds = array<i64: 47, 1, 128>}, {transform_indices = @transform_2, window_bounds = array<i64: 136, 128>}]} {
    %c0 = arith.constant 0 : index
    %c0_0 = arith.constant 0 : index
    %0 = vector.load %arg1[%c0, %c0_0] : memref<136x128xi32, #tpu.memory_space<vmem>>, vector<136x128xi32>
    %cst = arith.constant 0.000000e+00 : f32
    %1 = vector.broadcast %cst : f32 to vector<136x128xf32>
    %c0_i32 = arith.constant 0 : i32
    %c47_i32 = arith.constant 47 : i32
    %2 = arith.addi %c0_i32, %c47_i32 : i32
    %c1_i32 = arith.constant 1 : i32
    %3 = scf.for %arg4 = %c0_i32 to %2 step %c1_i32 iter_args(%arg5 = %1) -> (vector<136x128xf32>)  : i32 {
      %5 = arith.index_cast %arg4 : i32 to index
      %c0_4 = arith.constant 0 : index
      %c0_5 = arith.constant 0 : index
      %6 = vector.load %arg2[%5, %c0_4, %c0_5] : memref<47x1x128xf32, #tpu.memory_space<vmem>>, vector<1x1x128xf32>
      %7 = vector.shape_cast %6 : vector<1x1x128xf32> to vector<1x128xf32>
      %8 = vector.broadcast %arg4 : i32 to vector<136x128xi32>
      %9 = arith.cmpi eq, %0, %8 : vector<136x128xi32>
      %cst_6 = arith.constant 0.000000e+00 : f32
      %10 = vector.shape_cast %7 : vector<1x128xf32> to vector<1x128xf32>
      %11 = vector.broadcast %10 : vector<1x128xf32> to vector<136x128xf32>
      %12 = vector.broadcast %cst_6 : f32 to vector<136x128xf32>
      %13 = arith.select %9, %11, %12 : vector<136x128xi1>, vector<136x128xf32>
      %14 = arith.addf %arg5, %13 : vector<136x128xf32>
      scf.yield %14 : vector<136x128xf32>
    }
    %c47_i32_1 = arith.constant 47 : i32
    %c0_2 = arith.constant 0 : index
    %c0_3 = arith.constant 0 : index
    %4 = vector.load %arg3[%c0_2, %c0_3] : memref<136x128xf32, #tpu.memory_space<vmem>>, vector<136x128xf32>
    tpu.vector_store %arg3[%c0_2, %c0_3], %3 {strides = array<i32>} : memref<136x128xf32, #tpu.memory_space<vmem>>, vector<136x128xf32>,
    return
  }
  func.func @transform_0(%arg0: i32) -> (i32, i32) {
    %c0_i32 = arith.constant 0 : i32
    %c0_i32_0 = arith.constant 0 : i32
    return %arg0, %c0_i32 : i32, i32
  }
  func.func @transform_1(%arg0: i32) -> (i32, i32, i32) {
    %c0_i32 = arith.constant 0 : i32
    %c0_i32_0 = arith.constant 0 : i32
    %c0_i32_1 = arith.constant 0 : i32
    %c0_i32_2 = arith.constant 0 : i32
    return %c0_i32, %c0_i32_0, %c0_i32_1 : i32, i32, i32
  }
  func.func @transform_2(%arg0: i32) -> (i32, i32) {
    %c0_i32 = arith.constant 0 : i32
    %c0_i32_0 = arith.constant 0 : i32
    return %arg0, %c0_i32 : i32, i32
  }
}

</mosaic_0001>

<bundles_post_ra>
// kernel: a_call__.1
= control target key start
LH: loop header
LB: loop body
LE: loop exit
PB: predicated region body
PF: predicated region fallthrough
CT: control target
= control target key end

     0   :  { %v578_v17 = vmov 0.0   ;;  %v580_v18 = vmov 0.0   ;;  %v582_v19 = vmov 0.0   ;;  %v584_v20 = vmov 0.0   ;;  %s799_s0 = inlined_call_operand.vmem [shape: s32[136,128], index: 0, kind: input, shape index: {}]   ;;  %s800_s1 = inlined_call_operand.vmem [shape: f32[47,1,128], index: 1, kind: input, shape index: {}]   ;;  %s801_s2 = inlined_call_operand.vmem [shape: f32[136,128], index: 2, kind: output, shape index: {}]  }
   0x1   :  { %v496_v0 = vld [vmem:[%s799_s0] sm:$0xff]  ;;  %v501_v1 = vld [vmem:[%s799_s0 + $0x8] sm:$0xff]  ;;  %v506_v2 = vld [vmem:[%s799_s0 + $0x10] sm:$0xff]  ;;  %v586_v21 = vmov 0.0   ;;  %v588_v22 = vmov 0.0   ;;  %v590_v23 = vmov 0.0  }
   0x2   :  { %806 = vst [vmem:[#allocation2_spill] sm:$0xff] %v496_v0  ;;  %807 = vst [vmem:[#allocation3_spill] sm:$0xff] %v501_v1  ;;  %v511_v3 = vld [vmem:[%s799_s0 + $0x18] sm:$0xff]  ;;  %v516_v4 = vld [vmem:[%s799_s0 + $0x20] sm:$0xff]  ;;  %v592_v24 = vmov 0.0   ;;  %v594_v25 = vmov 0.0  }
   0x3   :  { %808 = vst [vmem:[#allocation4_spill] sm:$0xff] %v506_v2  ;;  %809 = vst [vmem:[#allocation5_spill] sm:$0xff] %v511_v3  ;;  %v521_v5 = vld [vmem:[%s799_s0 + $0x28] sm:$0xff]  ;;  %v526_v6 = vld [vmem:[%s799_s0 + $0x30] sm:$0xff]  ;;  %v596_v26 = vmov 0.0   ;;  %v598_v27 = vmov 0.0  }
   0x4   :  { %v531_v7 = vld [vmem:[%s799_s0 + $0x38] sm:$0xff]  ;;  %v536_v8 = vld [vmem:[%s799_s0 + $0x40] sm:$0xff]  ;;  %v541_v9 = vld [vmem:[%s799_s0 + $0x48] sm:$0xff]  ;;  %v600_v28 = vmov 0.0   ;;  %v602_v29 = vmov 0.0   ;;  %v604_v30 = vmov 0.0  }
   0x5   :  { %v546_v10 = vld [vmem:[%s799_s0 + $0x50] sm:$0xff]  ;;  %v551_v11 = vld [vmem:[%s799_s0 + $0x58] sm:$0xff]  ;;  %v556_v12 = vld [vmem:[%s799_s0 + $0x60] sm:$0xff]  ;;  %v606_v31 = vmov 0.0   ;;  %v608_v32 = vmov 0.0   ;;  %v610_v33 = vmov 0.0  }
   0x6   :  { %v561_v13 = vld [vmem:[%s799_s0 + $0x68] sm:$0xff]  ;;  %v566_v14 = vld [vmem:[%s799_s0 + $0x70] sm:$0xff]  ;;  %v571_v15 = vld [vmem:[%s799_s0 + $0x78] sm:$0xff] }
   0x7   :  { %v576_v16 = vld [vmem:[%s799_s0 + $0x80] sm:$0xff]  ;;  %s612_s0 = smov 0  }
   0x8 LB: > { %s51_s17 = scalar_lea.vmem %s800_s1, %s476_s0  ;;  %v53_v34 = vstv %s476_s0  ;;  %s33_s0 = sadd.s32 1, %s476_s0   ;;  %v420_v20 = vphi %v584_v20, %v820_v20   ;;  %v416_v19 = vphi %v582_v19, %v819_v19   ;;  %v412_v18 = vphi %v580_v18, %v818_v18   ;;  %v408_v17 = vphi %v578_v17, %v817_v17   ;;  %s476_s0 = sphi %s612_s0, %s33_s0   ;;  %v472_v33 = vphi %v610_v33, %v833_v33   ;;  %v468_v32 = vphi %v608_v32, %v832_v32   ;;  %v464_v31 = vphi %v606_v31, %v831_v31   ;;  %v460_v30 = vphi %v604_v30, %v830_v30   ;;  %v456_v29 = vphi %v602_v29, %v829_v29   ;;  %v452_v28 = vphi %v600_v28, %v828_v28   ;;  %v448_v27 = vphi %v598_v27, %v827_v27   ;;  %v444_v26 = vphi %v596_v26, %v826_v26   ;;  %v440_v25 = vphi %v594_v25, %v825_v25   ;;  %v436_v24 = vphi %v592_v24, %v824_v24   ;;  %v432_v23 = vphi %v590_v23, %v823_v23   ;;  %v428_v22 = vphi %v588_v22, %v822_v22   ;;  %v424_v21 = vphi %v586_v21, %v821_v21  }
   0x9   : > { %v812_v1 = vld [vmem:[#allocation3_spill] sm:$0xff]  ;;  %v813_v0 = vld [vmem:[#allocation2_spill] sm:$0xff]  ;;  %vm58_vm4 = vcmp.eq.s32.totalorder %v516_v4, %v53_v34  ;;  %vm59_vm5 = vcmp.eq.s32.totalorder %v521_v5, %v53_v34  ;;  %vm61_vm7 = vcmp.eq.s32.totalorder %v531_v7, %v53_v34  ;;  %vm62_vm8 = vcmp.eq.s32.totalorder %v536_v8, %v53_v34  ;;  %p706_p0 = scmp.ge.s32.totalorder %s33_s0, 47  }
   0xa   : > { %v810_v3 = vld [vmem:[#allocation5_spill] sm:$0xff]  ;;  %v811_v2 = vld [vmem:[#allocation4_spill] sm:$0xff]  ;;  %vm54_vm0 = vcmp.eq.s32.totalorder %v813_v0, %v53_v34  ;;  %vm55_vm1 = vcmp.eq.s32.totalorder %v812_v1, %v53_v34  ;;  %v189_v35 = vld [vmem:[%s51_s17] ss:$0 sm:$0xff]  ;;  %vm63_vm9 = vcmp.eq.s32.totalorder %v541_v9, %v53_v34  ;;  %vm64_vm10 = vcmp.eq.s32.totalorder %v546_v10, %v53_v34 }
   0xb   : > { %vm56_vm2 = vcmp.eq.s32.totalorder %v811_v2, %v53_v34  ;;  %vm57_vm3 = vcmp.eq.s32.totalorder %v810_v3, %v53_v34  ;;  %vm65_vm11 = vcmp.eq.s32.totalorder %v551_v11, %v53_v34  ;;  %vm66_vm12 = vcmp.eq.s32.totalorder %v556_v12, %v53_v34 }
   0xc   : > { %vm67_vm13 = vcmp.eq.s32.totalorder %v561_v13, %v53_v34  ;;  %vm68_vm14 = vcmp.eq.s32.totalorder %v566_v14, %v53_v34  ;;  %vm69_vm15 = vcmp.eq.s32.totalorder %v571_v15, %v53_v34  ;;  %v77_v36 = vsel %vm54_vm0, %v189_v35, 0.0 }
   0xd   : > { %v78_v37 = vsel %vm55_vm1, %v189_v35, 0.0  ;;  %v79_v38 = vsel %vm56_vm2, %v189_v35, 0.0  ;;  %v80_v39 = vsel %vm57_vm3, %v189_v35, 0.0  ;;  %v81_v40 = vsel %vm58_vm4, %v189_v35, 0.0 }
   0xe   : > { %v82_v41 = vsel %vm59_vm5, %v189_v35, 0.0  ;;  %vm814_vm6 = vcmp.eq.s32.totalorder %v526_v6, %v53_v34  ;;  %v84_v43 = vsel %vm61_vm7, %v189_v35, 0.0  ;;  %v85_v44 = vsel %vm62_vm8, %v189_v35, 0.0 }
   0xf   : > { %v83_v42 = vsel %vm814_vm6, %v189_v35, 0.0  ;;  %v86_v45 = vsel %vm63_vm9, %v189_v35, 0.0  ;;  %v87_v46 = vsel %vm64_vm10, %v189_v35, 0.0  ;;  %v88_v47 = vsel %vm65_vm11, %v189_v35, 0.0 }
  0x10   : > { %v89_v48 = vsel %vm66_vm12, %v189_v35, 0.0  ;;  %v90_v49 = vsel %vm67_vm13, %v189_v35, 0.0  ;;  %v91_v50 = vsel %vm68_vm14, %v189_v35, 0.0  ;;  %v92_v51 = vsel %vm69_vm15, %v189_v35, 0.0 }
  0x11   : > { %vm815_vm0 = vcmp.eq.s32.totalorder %v576_v16, %v53_v34  ;;  %v94_v53 = vadd.f32 %v472_v33, %v77_v36   ;;  %v95_v54 = vadd.f32 %v468_v32, %v78_v37   ;;  %v96_v55 = vadd.f32 %v464_v31, %v79_v38  }
  0x12   : > { %v93_v52 = vsel %vm815_vm0, %v189_v35, 0.0  ;;  %v97_v56 = vadd.f32 %v460_v30, %v80_v39   ;;  %v98_v57 = vadd.f32 %v456_v29, %v81_v40   ;;  %v99_v58 = vadd.f32 %v452_v28, %v82_v41  }
  0x13   : > { %v100_v59 = vadd.f32 %v448_v27, %v83_v42   ;;  %v101_v60 = vadd.f32 %v444_v26, %v84_v43   ;;  %v102_v61 = vadd.f32 %v440_v25, %v85_v44   ;;  %v103_v62 = vadd.f32 %v436_v24, %v86_v45   ;;  %111 = vst [vmem:[%s801_s2] sm:$0xff] (%p706_p0), %v94_v53 }
  0x14   : > { %v104_v63 = vadd.f32 %v432_v23, %v87_v46   ;;  %v105_v0 = vadd.f32 %v428_v22, %v88_v47   ;;  %v106_v1 = vadd.f32 %v424_v21, %v89_v48   ;;  %v107_v2 = vadd.f32 %v420_v20, %v90_v49   ;;  %112 = vst [vmem:[%s801_s2 + $0x8] sm:$0xff] (%p706_p0), %v95_v54 }
  0x15   : > { %v108_v3 = vadd.f32 %v416_v19, %v91_v50   ;;  %v109_v34 = vadd.f32 %v412_v18, %v92_v51   ;;  %v110_v35 = vadd.f32 %v408_v17, %v93_v52   ;;  %v824_v24 = vmov %v103_v62  ;;  %32 = sbr.rel (!%p706_p0) target bundleno = 8 (0x8), region = 36  ;;  %113 = vst [vmem:[%s801_s2 + $0x10] sm:$0xff] (%p706_p0), %v96_v55  ;;  %114 = vst [vmem:[%s801_s2 + $0x18] sm:$0xff] (%p706_p0), %v97_v56 }
  0x16   : > { %v820_v20 = vmov %v107_v2  ;;  %v821_v21 = vmov %v106_v1  ;;  %v822_v22 = vmov %v105_v0  ;;  %v823_v23 = vmov %v104_v63  ;;  %115 = vst [vmem:[%s801_s2 + $0x20] sm:$0xff] (%p706_p0), %v98_v57  ;;  %116 = vst [vmem:[%s801_s2 + $0x28] sm:$0xff] (%p706_p0), %v99_v58 }
  0x17   : > { %v817_v17 = vmov %v110_v35  ;;  %v818_v18 = vmov %v109_v34  ;;  %v819_v19 = vmov %v108_v3  ;;  %v825_v25 = vmov %v102_v61  ;;  %117 = vst [vmem:[%s801_s2 + $0x30] sm:$0xff] (%p706_p0), %v100_v59  ;;  %118 = vst [vmem:[%s801_s2 + $0x38] sm:$0xff] (%p706_p0), %v101_v60 }
  0x18   : > { %v826_v26 = vmov %v101_v60  ;;  %v827_v27 = vmov %v100_v59  ;;  %v828_v28 = vmov %v99_v58  ;;  %v829_v29 = vmov %v98_v57  ;;  %119 = vst [vmem:[%s801_s2 + $0x40] sm:$0xff] (%p706_p0), %v102_v61  ;;  %120 = vst [vmem:[%s801_s2 + $0x48] sm:$0xff] (%p706_p0), %v103_v62 }
  0x19   : > { %v830_v30 = vmov %v97_v56  ;;  %v831_v31 = vmov %v96_v55  ;;  %v832_v32 = vmov %v95_v54  ;;  %v833_v33 = vmov %v94_v53  ;;  %121 = vst [vmem:[%s801_s2 + $0x50] sm:$0xff] (%p706_p0), %v104_v63  ;;  %122 = vst [vmem:[%s801_s2 + $0x58] sm:$0xff] (%p706_p0), %v105_v0 }
  0x1a   :  { %123 = vst [vmem:[%s801_s2 + $0x60] sm:$0xff] %v106_v1  ;;  %124 = vst [vmem:[%s801_s2 + $0x68] sm:$0xff] %v107_v2 }
  0x1b   :  { %125 = vst [vmem:[%s801_s2 + $0x70] sm:$0xff] %v108_v3  ;;  %126 = vst [vmem:[%s801_s2 + $0x78] sm:$0xff] %v109_v34 }
  0x1c   :  { %127 = vst [vmem:[%s801_s2 + $0x80] sm:$0xff] %v110_v35 }

</bundles_post_ra>
